<compile_context>
chip_gen: v6e
topology: v6e:2x2x1
jax: 0.10.0
libtpu: 0.0.40
codegen_flags: <defaults>
</compile_context>

<pallas_src>
import numpy as np
import jax
import jax.numpy as jnp
from jax.experimental import pallas as pl
from jax.experimental.pallas import tpu as pltpu

# ---- module hyperparameters (mirrors Adapt_PC_MLP.__init__ arguments) ----
SUPPLY_T_COL = 6
SUPPLY_M_COL = 7
POWER_COL = 8
TEMPERATURE_COL = 3          # indexes both x_ (raw) and x (selected), as in torch code
INPUTS_D = [0, 1, 2, 3, 4, 5]
DIVISION_FACTOR = [4.0]
ACTIVATION_FUNCTION = 0      # 0 = ReLU, 1 = Sigmoid, 2 = Tanh
MLP_HIDDEN = 32
MLP_NUM_LAYERS = 2
NUM_HIDDEN = MLP_NUM_LAYERS - 1
D_IN = len(INPUTS_D)
H = MLP_HIDDEN               # main-MLP hidden width
C1 = 64                      # fc1 output width
MAX_TB = 2048                # batch-tile cap (VMEM-safe on v5e/v6e/v7x)
assert NUM_HIDDEN >= 1


def _act(x):
    if ACTIVATION_FUNCTION == 0:
        return jnp.maximum(x, 0.0)
    elif ACTIVATION_FUNCTION == 1:
        return jax.nn.sigmoid(x)
    else:
        return jnp.tanh(x)


def _softplus(x):
    # numerically-stable softplus (matches torch F.softplus semantics)
    return jnp.maximum(x, 0.0) + jnp.log1p(jnp.exp(-jnp.abs(x)))


# ------------------------------- Pallas kernel -------------------------------
def adapt_pc_mlp_kernel(xt_ref, ra_ref, w1x_ref, w1r_ref, wh_ref, wom_ref,
                        fc2_ref, out_ref):
    xt = xt_ref[...]                                            # [F, TB]
    ra = ra_ref[...]                                            # [1, TB]

    # ---- fused layer 1 (main-MLP w0 + coefficient fc1, zero bias) ----
    # Feature selection + temperature substitution are baked into w1x/w1r:
    #   z1 = W1x @ x_.T + W1r * RA_T
    z1 = (jnp.dot(w1x_ref[...], xt, preferred_element_type=jnp.float32)
          + w1r_ref[...] * ra)                                  # [H+C1, TB]
    h = _act(z1[0:H, :])                                        # main MLP branch
    c = _softplus(z1[H:H + C1, :])                              # coefficient branch

    # ---- hidden layers of the main MLP (statically unrolled, zero bias) ----
    for l in range(NUM_HIDDEN):
        w = wh_ref[l * H:(l + 1) * H, :]                        # [H, H]
        h = _act(jnp.dot(w, h, preferred_element_type=jnp.float32))

    # ---- output layers (split: no concat, no zero-block matmul) ----
    # wo row is pre-scaled by 1/division_factor at init time.
    temp_scaled = jnp.dot(wom_ref[...], h,
                          preferred_element_type=jnp.float32)   # [1, TB]
    cab = _softplus(jnp.dot(fc2_ref[...], c,
                            preferred_element_type=jnp.float32))  # [2, TB]
    coeff_a = cab[0:1, :]
    coeff_b = cab[1:2, :]

    sa_t = xt[SUPPLY_T_COL:SUPPLY_T_COL + 1, :]
    sa_v = xt[SUPPLY_M_COL:SUPPLY_M_COL + 1, :]
    it_p = xt[POWER_COL:POWER_COL + 1, :]

    cool = coeff_a * (ra - sa_t) * sa_v * 0.01
    heat = coeff_b * it_p * 0.01
    out_ref[...] = ra + temp_scaled - cool + heat


def _pallas_forward(xt, ra, params, block_b):
    """xt: [F, B_pad] transposed raw input; ra: [1, B_pad] RA_T row."""
    f_total, b_pad = xt.shape
    nb = b_pad // block_b
    w1x, w1r, wh, wom, fc2 = (params["w1x"], params["w1r"], params["wh"],
                              params["wom"], params["fc2"])
    return pl.pallas_call(
        adapt_pc_mlp_kernel,
        out_shape=jax.ShapeDtypeStruct((1, b_pad), jnp.float32),
        grid=(nb,),
        in_specs=[
            pl.BlockSpec((f_total, block_b), lambda i: (0, i)),   # x_.T: tile batch
            pl.BlockSpec((1, block_b), lambda i: (0, i)),         # RA_T row
            pl.BlockSpec(w1x.shape, lambda i: (0, 0)),            # weights: resident
            pl.BlockSpec(w1r.shape, lambda i: (0, 0)),
            pl.BlockSpec(wh.shape, lambda i: (0, 0)),
            pl.BlockSpec(wom.shape, lambda i: (0, 0)),
            pl.BlockSpec(fc2.shape, lambda i: (0, 0)),
        ],
        out_specs=pl.BlockSpec((1, block_b), lambda i: (0, i)),   # lane-dense output
        compiler_params=pltpu.CompilerParams(
            dimension_semantics=("parallel",),                    # megacore on v7x
            vmem_limit_bytes=32 * 1024 * 1024),                   # > v5e 16MiB default,
                                                                  # <= v7x 64MiB physical
    )(xt, ra, w1x, w1r, wh, wom, fc2)


# --------------------------------- tiling ---------------------------------
def _round_up(n, m):
    return ((n + m - 1) // m) * m


def _pick_block(B, block_b=None):
    """Choose (block_b, b_pad): single big tile when it fits, else even #steps."""
    if block_b is not None:
        assert block_b % 128 == 0, "block_b must be a multiple of 128 (lane tile)"
        return block_b, _round_up(B, block_b)
    b128 = _round_up(B, 128)
    if b128 <= MAX_TB:
        return b128, b128                      # single tile covers padded batch
    nb = -(-b128 // MAX_TB)                    # ceil
    if nb % 2:
        nb += 1                                # even #steps -> both v7x TCs busy
    block_b = _round_up(-(-b128 // nb), 128)   # <= MAX_TB by construction
    return block_b, _round_up(B, block_b)


# --------------------------------- glue code ---------------------------------
def forward(x_, params, last_D=None, warm_start=True, block_b=None):
    """JAX/Pallas equivalent of Adapt_PC_MLP.forward. Returns output (== new last_D)."""
    x_ = x_.astype(jnp.float32)
    B = x_.shape[0]
    xt = x_.T                                                    # [F, B]
    if warm_start:
        ra = xt[TEMPERATURE_COL:TEMPERATURE_COL + 1, :]          # [1, B]
    else:
        ra = last_D.astype(jnp.float32).T                        # [1, B]

    block_b, b_pad = _pick_block(B, block_b)
    if b_pad != B:
        pad = b_pad - B
        xt = jnp.pad(xt, ((0, 0), (0, pad)))
        ra = jnp.pad(ra, ((0, 0), (0, pad)))

    out = _pallas_forward(xt, ra, params, block_b)               # [1, b_pad]
    return out[0, :B].reshape(B, 1)


# -------------------------- deterministic parameters --------------------------
def _xavier_normal(key, fan_in, fan_out):
    std = float(np.sqrt(2.0 / (fan_in + fan_out)))
    return std * jax.random.normal(key, (fan_in, fan_out), jnp.float32)


def init_params(key, f_total):
    ks = jax.random.split(key, 5)
    w0 = _xavier_normal(ks[0], D_IN, H)                    # [6, 32]
    wh = jnp.stack([_xavier_normal(k, H, H)
                    for k in jax.random.split(ks[1], NUM_HIDDEN)])  # [NH, 32, 32]
    wo = _xavier_normal(ks[2], H, 1)                       # [32, 1]
    fc1w = _xavier_normal(ks[3], 4, C1)                    # [4, 64]
    fc2w = _xavier_normal(ks[4], C1, 2)                    # [64, 2]

    # --- packed layer-1 weights, indexed directly by raw x_ columns ---
    # w1x [H+C1, F]: main-MLP rows 0:H take w0 at INPUTS_D columns (temperature
    # column left zero -> it comes through w1r * RA_T); coefficient rows H:H+C1
    # take fc1^T at the SA_T / SA_V / IT_P columns.
    w1x = jnp.zeros((H + C1, f_total), jnp.float32)
    for j, f in enumerate(INPUTS_D):
        if j != TEMPERATURE_COL:
            w1x = w1x.at[0:H, f].set(w0[j, :])
    w1x = w1x.at[H:, SUPPLY_T_COL].set(fc1w[0, :])
    w1x = w1x.at[H:, SUPPLY_M_COL].set(fc1w[1, :])
    w1x = w1x.at[H:, POWER_COL].set(fc1w[2, :])

    # w1r [H+C1, 1]: contribution of RA_T (temperature row of w0, last row of fc1).
    w1r = jnp.zeros((H + C1, 1), jnp.float32)
    w1r = w1r.at[0:H, 0].set(w0[TEMPERATURE_COL, :])
    w1r = w1r.at[H:, 0].set(fc1w[3, :])

    whp = jnp.concatenate([wh[l].T for l in range(NUM_HIDDEN)], axis=0)  # [NH*H, H]

    # output weights: wo^T pre-scaled by 1/division_factor; fc2^T separate.
    wom = (wo.T / DIVISION_FACTOR[0]).astype(jnp.float32)    # [1, H]
    fc2t = fc2w.T.astype(jnp.float32)                        # [2, C1]

    # all biases are zero (nn.init.constant_(bias, 0.0)) -> no bias operand.
    params = dict(w1x=w1x, w1r=w1r, wh=whp, wom=wom, fc2=fc2t)
    raw = dict(w0=w0, wh=wh, wo=wo, fc1w=fc1w, fc2w=fc2w)
    return params, raw


# ------------------------------ pure-JAX reference -----------------------------
def reference_forward(x_, raw, last_D=None, warm_start=True):
    x_ = x_.astype(jnp.float32)
    x = x_[:, jnp.array(INPUTS_D)]
    sa_t = x_[:, SUPPLY_T_COL:SUPPLY_T_COL + 1]
    sa_v = x_[:, SUPPLY_M_COL:SUPPLY_M_COL + 1]
    it_p = x_[:, POWER_COL:POWER_COL + 1]
    if warm_start:
        ra_t = x_[:, TEMPERATURE_COL:TEMPERATURE_COL + 1]
    else:
        x = x.at[:, TEMPERATURE_COL].set(last_D[:, 0])
        ra_t = last_D
    comb = jnp.concatenate([sa_t, sa_v, it_p, ra_t], axis=1)

    h = _act(x @ raw["w0"])
    for l in range(NUM_HIDDEN):
        h = _act(h @ raw["wh"][l])
    temp = h @ raw["wo"]
    c = _softplus(comb @ raw["fc1w"])
    c = _softplus(c @ raw["fc2w"])
    coeff_a, coeff_b = c[:, 0:1], c[:, 1:2]
    cool = coeff_a * (ra_t - sa_t) * sa_v / 100.0
    heat = coeff_b * it_p / 100.0
    return ra_t + temp / DIVISION_FACTOR[0] - cool + heat


# ------------------------------------ main ------------------------------------
if __name__ == "__main__":
    key = jax.random.PRNGKey(0)
    pkey, xkey = jax.random.split(key)

    B, F = 256, 10
    params, raw = init_params(pkey, F)
    x_ = jax.random.normal(xkey, (B, F), jnp.float32)

    # warm-start step (RA_T from the input's temperature column); single tile
    out1 = jax.block_until_ready(forward(x_, params, warm_start=True))
    # closed-loop step (RA_T = previous output); explicit 2-step grid (128-tiles)
    out2 = jax.block_until_ready(
        forward(x_, params, last_D=out1, warm_start=False, block_b=128))

    ref1 = reference_forward(x_, raw, warm_start=True)
    ref2 = reference_forward(x_, raw, last_D=ref1, warm_start=False)

    np.testing.assert_allclose(np.asarray(out1), np.asarray(ref1), rtol=1e-4, atol=1e-5)
    np.testing.assert_allclose(np.asarray(out2), np.asarray(ref2), rtol=1e-4, atol=1e-5)
    assert out1.shape == (B, 1) and out2.shape == (B, 1)
    print("KERNEL_OK")
</pallas_src>

<mosaic_0001>
module attributes {stable_mosaic.version = 11 : i64} {
  func.func @adapt_pc_mlp_kernel(%arg0: i32, %arg1: memref<10x256xf32, #tpu.memory_space<vmem>>, %arg2: memref<1x256xf32, #tpu.memory_space<vmem>>, %arg3: memref<96x10xf32, #tpu.memory_space<vmem>>, %arg4: memref<96x1xf32, #tpu.memory_space<vmem>>, %arg5: memref<32x32xf32, #tpu.memory_space<vmem>>, %arg6: memref<1x32xf32, #tpu.memory_space<vmem>>, %arg7: memref<2x64xf32, #tpu.memory_space<vmem>>, %arg8: memref<1x256xf32, #tpu.memory_space<vmem>>) attributes {dimension_semantics = [#tpu.dimension_semantics<parallel>], iteration_bounds = array<i64: 1>, scalar_prefetch = 0 : i64, scratch_operands = 0 : i64, tpu.core_type = #tpu.core_type<tc>, window_params = [{transform_indices = @transform_0, window_bounds = array<i64: 10, 256>}, {transform_indices = @transform_1, window_bounds = array<i64: 1, 256>}, {pipeline_mode = #tpu.pipeline_mode<synchronous>, transform_indices = @transform_2, window_bounds = array<i64: 96, 10>}, {pipeline_mode = #tpu.pipeline_mode<synchronous>, transform_indices = @transform_3, window_bounds = array<i64: 96, 1>}, {pipeline_mode = #tpu.pipeline_mode<synchronous>, transform_indices = @transform_4, window_bounds = array<i64: 32, 32>}, {pipeline_mode = #tpu.pipeline_mode<synchronous>, transform_indices = @transform_5, window_bounds = array<i64: 1, 32>}, {pipeline_mode = #tpu.pipeline_mode<synchronous>, transform_indices = @transform_6, window_bounds = array<i64: 2, 64>}, {transform_indices = @transform_7, window_bounds = array<i64: 1, 256>}]} {
    %c0 = arith.constant 0 : index
    %c0_0 = arith.constant 0 : index
    %0 = vector.load %arg1[%c0, %c0_0] : memref<10x256xf32, #tpu.memory_space<vmem>>, vector<10x256xf32>
    %c0_1 = arith.constant 0 : index
    %c0_2 = arith.constant 0 : index
    %1 = vector.load %arg2[%c0_1, %c0_2] : memref<1x256xf32, #tpu.memory_space<vmem>>, vector<1x256xf32>
    %c0_3 = arith.constant 0 : index
    %c0_4 = arith.constant 0 : index
    %2 = vector.load %arg3[%c0_3, %c0_4] : memref<96x10xf32, #tpu.memory_space<vmem>>, vector<96x10xf32>
    %cst = arith.constant dense<0.000000e+00> : vector<96x256xf32>
    %3 = tpu.matmul %2, %0, %cst {dimension_numbers = #tpu.dot_dimension_numbers<[1], [0], [0], [1], [0, 0, 1, 1], [], []>} : vector<96x10xf32>, vector<10x256xf32>, vector<96x256xf32> -> vector<96x256xf32>
    %c0_5 = arith.constant 0 : index
    %c0_6 = arith.constant 0 : index
    %4 = vector.load %arg4[%c0_5, %c0_6] : memref<96x1xf32, #tpu.memory_space<vmem>>, vector<96x1xf32>
    %5 = vector.broadcast %4 : vector<96x1xf32> to vector<96x256xf32>
    %6 = vector.broadcast %1 : vector<1x256xf32> to vector<96x256xf32>
    %7 = arith.mulf %5, %6 : vector<96x256xf32>
    %8 = arith.addf %3, %7 : vector<96x256xf32>
    %9 = vector.extract_strided_slice %8 {offsets = [0, 0], sizes = [32, 256], strides = [1, 1]} : vector<96x256xf32> to vector<32x256xf32>
    %cst_7 = arith.constant 0.000000e+00 : f32
    %10 = vector.broadcast %cst_7 : f32 to vector<32x256xf32>
    %11 = arith.maximumf %9, %10 : vector<32x256xf32>
    %12 = vector.extract_strided_slice %8 {offsets = [32, 0], sizes = [64, 256], strides = [1, 1]} : vector<96x256xf32> to vector<64x256xf32>
    %cst_8 = arith.constant 0.000000e+00 : f32
    %13 = vector.broadcast %cst_8 : f32 to vector<64x256xf32>
    %14 = arith.maximumf %12, %13 : vector<64x256xf32>
    %15 = math.absf %12 : vector<64x256xf32>
    %cst_9 = arith.constant 0.000000e+00 : f32
    %16 = vector.broadcast %cst_9 : f32 to vector<64x256xf32>
    %17 = arith.subf %16, %15 : vector<64x256xf32>
    %18 = math.exp %17 : vector<64x256xf32>
    %19 = math.log1p %18 : vector<64x256xf32>
    %20 = arith.addf %14, %19 : vector<64x256xf32>
    %c0_10 = arith.constant 0 : index
    %c0_11 = arith.constant 0 : index
    %21 = vector.load %arg5[%c0_10, %c0_11] : memref<32x32xf32, #tpu.memory_space<vmem>>, vector<32x32xf32>
    %cst_12 = arith.constant dense<0.000000e+00> : vector<32x256xf32>
    %22 = tpu.matmul %21, %11, %cst_12 {dimension_numbers = #tpu.dot_dimension_numbers<[1], [0], [0], [1], [0, 0, 1, 1], [], []>} : vector<32x32xf32>, vector<32x256xf32>, vector<32x256xf32> -> vector<32x256xf32>
    %cst_13 = arith.constant 0.000000e+00 : f32
    %23 = vector.broadcast %cst_13 : f32 to vector<32x256xf32>
    %24 = arith.maximumf %22, %23 : vector<32x256xf32>
    %c0_14 = arith.constant 0 : index
    %c0_15 = arith.constant 0 : index
    %25 = vector.load %arg6[%c0_14, %c0_15] : memref<1x32xf32, #tpu.memory_space<vmem>>, vector<1x32xf32>
    %cst_16 = arith.constant dense<0.000000e+00> : vector<1x256xf32>
    %26 = tpu.matmul %25, %24, %cst_16 {dimension_numbers = #tpu.dot_dimension_numbers<[1], [0], [0], [1], [0, 0, 1, 1], [], []>} : vector<1x32xf32>, vector<32x256xf32>, vector<1x256xf32> -> vector<1x256xf32>
    %c0_17 = arith.constant 0 : index
    %c0_18 = arith.constant 0 : index
    %27 = vector.load %arg7[%c0_17, %c0_18] : memref<2x64xf32, #tpu.memory_space<vmem>>, vector<2x64xf32>
    %cst_19 = arith.constant dense<0.000000e+00> : vector<2x256xf32>
    %28 = tpu.matmul %27, %20, %cst_19 {dimension_numbers = #tpu.dot_dimension_numbers<[1], [0], [0], [1], [0, 0, 1, 1], [], []>} : vector<2x64xf32>, vector<64x256xf32>, vector<2x256xf32> -> vector<2x256xf32>
    %cst_20 = arith.constant 0.000000e+00 : f32
    %29 = vector.broadcast %cst_20 : f32 to vector<2x256xf32>
    %30 = arith.maximumf %28, %29 : vector<2x256xf32>
    %31 = math.absf %28 : vector<2x256xf32>
    %cst_21 = arith.constant 0.000000e+00 : f32
    %32 = vector.broadcast %cst_21 : f32 to vector<2x256xf32>
    %33 = arith.subf %32, %31 : vector<2x256xf32>
    %34 = math.exp %33 : vector<2x256xf32>
    %35 = math.log1p %34 : vector<2x256xf32>
    %36 = arith.addf %30, %35 : vector<2x256xf32>
    %37 = vector.extract_strided_slice %36 {offsets = [0, 0], sizes = [1, 256], strides = [1, 1]} : vector<2x256xf32> to vector<1x256xf32>
    %38 = vector.extract_strided_slice %36 {offsets = [1, 0], sizes = [1, 256], strides = [1, 1]} : vector<2x256xf32> to vector<1x256xf32>
    %39 = vector.extract_strided_slice %0 {offsets = [6, 0], sizes = [1, 256], strides = [1, 1]} : vector<10x256xf32> to vector<1x256xf32>
    %40 = vector.extract_strided_slice %0 {offsets = [7, 0], sizes = [1, 256], strides = [1, 1]} : vector<10x256xf32> to vector<1x256xf32>
    %41 = vector.extract_strided_slice %0 {offsets = [8, 0], sizes = [1, 256], strides = [1, 1]} : vector<10x256xf32> to vector<1x256xf32>
    %42 = arith.subf %1, %39 : vector<1x256xf32>
    %43 = arith.mulf %37, %42 : vector<1x256xf32>
    %44 = arith.mulf %43, %40 : vector<1x256xf32>
    %cst_22 = arith.constant 0.00999999977 : f32
    %45 = vector.broadcast %cst_22 : f32 to vector<1x256xf32>
    %46 = arith.mulf %44, %45 : vector<1x256xf32>
    %47 = arith.mulf %38, %41 : vector<1x256xf32>
    %cst_23 = arith.constant 0.00999999977 : f32
    %48 = vector.broadcast %cst_23 : f32 to vector<1x256xf32>
    %49 = arith.mulf %47, %48 : vector<1x256xf32>
    %50 = arith.addf %1, %26 : vector<1x256xf32>
    %51 = arith.subf %50, %46 : vector<1x256xf32>
    %52 = arith.addf %51, %49 : vector<1x256xf32>
    %c0_24 = arith.constant 0 : index
    %c0_25 = arith.constant 0 : index
    %53 = vector.load %arg8[%c0_24, %c0_25] : memref<1x256xf32, #tpu.memory_space<vmem>>, vector<1x256xf32>
    tpu.vector_store %arg8[%c0_24, %c0_25], %52 {strides = array<i32>} : memref<1x256xf32, #tpu.memory_space<vmem>>, vector<1x256xf32>,
    return
  }
  func.func @transform_0(%arg0: i32) -> (i32, i32) {
    %c0_i32 = arith.constant 0 : i32
    %c0_i32_0 = arith.constant 0 : i32
    return %c0_i32, %arg0 : i32, i32
  }
  func.func @transform_1(%arg0: i32) -> (i32, i32) {
    %c0_i32 = arith.constant 0 : i32
    %c0_i32_0 = arith.constant 0 : i32
    return %c0_i32, %arg0 : i32, i32
  }
  func.func @transform_2(%arg0: i32) -> (i32, i32) {
    %c0_i32 = arith.constant 0 : i32
    %c0_i32_0 = arith.constant 0 : i32
    %c0_i32_1 = arith.constant 0 : i32
    return %c0_i32, %c0_i32_0 : i32, i32
  }
  func.func @transform_3(%arg0: i32) -> (i32, i32) {
    %c0_i32 = arith.constant 0 : i32
    %c0_i32_0 = arith.constant 0 : i32
    %c0_i32_1 = arith.constant 0 : i32
    return %c0_i32, %c0_i32_0 : i32, i32
  }
  func.func @transform_4(%arg0: i32) -> (i32, i32) {
    %c0_i32 = arith.constant 0 : i32
    %c0_i32_0 = arith.constant 0 : i32
    %c0_i32_1 = arith.constant 0 : i32
    return %c0_i32, %c0_i32_0 : i32, i32
  }
  func.func @transform_5(%arg0: i32) -> (i32, i32) {
    %c0_i32 = arith.constant 0 : i32
    %c0_i32_0 = arith.constant 0 : i32
    %c0_i32_1 = arith.constant 0 : i32
    return %c0_i32, %c0_i32_0 : i32, i32
  }
  func.func @transform_6(%arg0: i32) -> (i32, i32) {
    %c0_i32 = arith.constant 0 : i32
    %c0_i32_0 = arith.constant 0 : i32
    %c0_i32_1 = arith.constant 0 : i32
    return %c0_i32, %c0_i32_0 : i32, i32
  }
  func.func @transform_7(%arg0: i32) -> (i32, i32) {
    %c0_i32 = arith.constant 0 : i32
    %c0_i32_0 = arith.constant 0 : i32
    return %c0_i32, %arg0 : i32, i32
  }
}

</mosaic_0001>

<bundles_post_ra>
// kernel: tpu_custom_call.1
= control target key start
LH: loop header
LB: loop body
LE: loop exit
PB: predicated region body
PF: predicated region fallthrough
CT: control target
= control target key end

     0   :  { %vm188_vm0 = vcmask 1041408   ;;  %v1742_v4 = vlaneseq  ;;  %v1126_v7 = vmov 1966171168   ;;  %vm151_vm1 = vcmask 80896   ;;  %s1734_s0 = inlined_call_operand.vmem [shape: f32[10,256], index: 0, kind: input, shape index: {}]   ;;  %s1735_s1 = inlined_call_operand.vmem [shape: f32[1,256], index: 1, kind: input, shape index: {}]   ;;  %s1736_s2 = inlined_call_operand.vmem [shape: f32[96,10], index: 2, kind: input, shape index: {}]   ;;  %s1737_s3 = inlined_call_operand.vmem [shape: f32[96,1], index: 3, kind: input, shape index: {}]   ;;  %s1738_s4 = inlined_call_operand.vmem [shape: f32[32,32], index: 4, kind: input, shape index: {}]   ;;  %s1739_s5 = inlined_call_operand.vmem [shape: f32[1,32], index: 5, kind: input, shape index: {}]   ;;  %s1740_s6 = inlined_call_operand.vmem [shape: f32[2,64], index: 6, kind: input, shape index: {}]   ;;  %s1741_s7 = inlined_call_operand.hbm [shape: f32[1,256], index: 7, kind: output, shape index: {}]  }
   0x1   :  { %v30_v0 = vld [vmem:[%s1734_s0 + $0x18] sm:$0x3]  ;;  %v29_v1 = vld [vmem:[%s1734_s0 + $0x10] sm:$0x3]  ;;  %v28_v2 = vld [vmem:[%s1734_s0 + $0x8] sm:$0xff]  ;;  %v879_v8 = vunpack.c.l.s4 %v1126_v7  ;;  %v1745_v9 = vmov 0.0  }
   0x2   :  { %1001 = vmatprep.subr.msk.mxu0 %vm188_vm0, %v30_v0  ;;  %v27_v3 = vld [vmem:[%s1734_s0] sm:$0xff]  ;;  %259 = vmatprep.mubr.f32.mxu0 %v1745_v9  ;;  %v1187_v10 = vshrl.u32 %v1742_v4, 7  ;;  %v1128_v12 = vmov 0   ;;  %v33_v13 = vld [vmem:[%s1736_s2 + $0x8] sm:$0xff]  ;;  %v47_v14 = vld [vmem:[%s1737_s3 + $0x18] sm:$0xff] }
   0x3   :  { %1002 = vmatpush1.msk.msra.mxu0 %vm188_vm0, %v29_v1  ;;  %v877_v5 = vcombine.high %v27_v3, %v28_v2  ;;  %v32_v6 = vld [vmem:[%s1736_s2] sm:$0xff]  ;;  %v880_v11 = vunpack.c.0.s8 %v879_v8  ;;  %1025 = vset.pattern.permute.xlu0 %v1128_v12  ;;  %v45_v16 = vld [vmem:[%s1737_s3 + $0x8] sm:$0xff]  ;;  %v46_v17 = vld [vmem:[%s1737_s3 + $0x10] sm:$0xff] }
   0x4   :  { %225 = vmatprep.subr.mxu0 %v28_v2  ;;  %1763 = vst [vmem:[#allocation5_spill] sm:$0xff] %v1187_v10  ;;  %1026 = vset.pattern.permute.xlu1 %v1128_v12  ;;  %v44_v19 = vld [vmem:[%s1737_s3] sm:$0xff]  ;;  %v34_v20 = vld [vmem:[%s1736_s2 + $0x10] sm:$0xff] }
   0x5   :  { %226 = vmatpush1.msra.mxu0 %v27_v3  ;;  %v1198_v15 = vsub.s32 %v880_v11, %v1187_v10  ;;  %73 = vperm.xlu0 %1025, %v47_v14  }
   0x6   :  { %1003 = vmatmul.mubr.msk.f32.vlgmr.msra.gmra.mxu0 %vm151_vm1, %v32_v6  ;;  %661 = vmatprep.mubr.f32.mxu1 %v1745_v9 }
   0x7   :  { %265 = vmatprep.mubr.f32.mxu0 %v1745_v9  ;;  %1764 = vst [vmem:[#allocation6_spill] sm:$0xff] %v1198_v15  ;;  %63 = vperm.xlu1 %1026, %v45_v16   ;;  %v884_v18 = vrot.slane %v877_v5, %v1198_v15 }
   0xa   :  { %1004 = vmatmul.mubr.msk.f32.gmra.mxu0 %vm151_vm1, %v33_v13 }
   0xb   :  { %271 = vmatprep.mubr.f32.mxu0 %v1745_v9 }
   0xc   :  { %12 = vsyncpa [#allocation3], 0  ;;  %v1217_v21 = vrot.slane %v884_v18, %v1198_v15  ;;  %68 = vperm.xlu0 %1025, %v46_v17   ;;  %v55_v22 = vld [vmem:[%s1737_s3 + $0x58] sm:$0xff]  ;;  %58 = vperm.xlu1 %1026, %v44_v19   ;;  %v54_v23 = vld [vmem:[%s1737_s3 + $0x50] sm:$0xff]  ;;  %v1744_v41 = vsub.s32 0, %v1187_v10  ;;  %v1743_v45 = vsub.s32 1, %v1187_v10 }
   0xd   :  { %v35_v24 = vld [vmem:[%s1736_s2 + $0x18] sm:$0xff]  ;;  %v53_v25 = vld [vmem:[%s1737_s3 + $0x48] sm:$0xff]  ;;  %v52_v26 = vld [vmem:[%s1737_s3 + $0x40] sm:$0xff]  ;;  %vm584_vm2 = vcmask 261120  }
   0xe   :  { %1765 = vst [vmem:[#allocation7_spill] sm:$0xff] %v1217_v21  ;;  %1005 = vmatmul.mubr.msk.f32.gmra.mxu0 %vm151_vm1, %v34_v20  ;;  %v36_v27 = vld [vmem:[%s1736_s2 + $0x20] sm:$0xff]  ;;  %v51_v28 = vld [vmem:[%s1737_s3 + $0x38] sm:$0xff]  ;;  %v50_v29 = vld [vmem:[%s1737_s3 + $0x30] sm:$0xff] }
   0xf   :  { %277 = vmatprep.mubr.f32.mxu0 %v1745_v9  ;;  %v37_v30 = vld [vmem:[%s1736_s2 + $0x28] sm:$0xff]  ;;  %v48_v32 = vld [vmem:[%s1737_s3 + $0x20] sm:$0xff]  ;;  %v38_v33 = vld [vmem:[%s1736_s2 + $0x30] sm:$0xff] }
  0x10   :  { %113 = vperm.xlu0 %1025, %v55_v22   ;;  %108 = vperm.xlu1 %1026, %v54_v23   ;;  %v49_v31 = vld [vmem:[%s1737_s3 + $0x28] sm:$0xff]  ;;  %v39_v34 = vld [vmem:[%s1736_s2 + $0x38] sm:$0xff]  ;;  %v40_v35 = vld [vmem:[%s1736_s2 + $0x40] sm:$0xff] }
  0x11   :  { %v41_v36 = vld [vmem:[%s1736_s2 + $0x48] sm:$0xff]  ;;  %v42_v37 = vld [vmem:[%s1736_s2 + $0x50] sm:$0xff]  ;;  %v43_v38 = vld [vmem:[%s1736_s2 + $0x58] sm:$0xff] }
  0x12   :  { %1006 = vmatmul.mubr.msk.f32.gmra.mxu0 %vm151_vm1, %v35_v24  ;;  %v1293_v44 = vld [vmem:[%s1735_s1] sm:$0x3]  ;;  %v581_v22 = vld [vmem:[%s1738_s4 + $0x8] sm:$0xff]  ;;  %v582_v23 = vld [vmem:[%s1738_s4 + $0x10] sm:$0xff] }
  0x13   :  { %283 = vmatprep.mubr.f32.mxu0 %v1745_v9  ;;  %1766 = vst [vmem:[#allocation8_spill] sm:$0xff] %v1293_v44  ;;  %v1299_v48 = vrot.slane %v1293_v44, %v1744_v41  ;;  %v1304_v50 = vrot.slane %v1293_v44, %v1743_v45  ;;  %v580_v20 = vld [vmem:[%s1738_s4] sm:$0xff]  ;;  %v583_v24 = vld [vmem:[%s1738_s4 + $0x18] sm:$0xff] }
  0x14   :  { %103 = vperm.xlu0 %1025, %v53_v25   ;;  %98 = vperm.xlu1 %1026, %v52_v26  }
  0x16   :  { %1007 = vmatmul.mubr.msk.f32.gmra.mxu0 %vm151_vm1, %v36_v27 }
  0x17   :  { %289 = vmatprep.mubr.f32.mxu0 %v1745_v9 }
  0x18   :  { %93 = vperm.xlu0 %1025, %v51_v28   ;;  %88 = vperm.xlu1 %1026, %v50_v29  }
  0x1a   :  { %1008 = vmatmul.mubr.msk.f32.gmra.mxu0 %vm151_vm1, %v37_v30 }
  0x1b   :  { %295 = vmatprep.mubr.f32.mxu0 %v1745_v9 }
  0x1c   :  { %83 = vperm.xlu0 %1025, %v49_v31   ;;  %78 = vperm.xlu1 %1026, %v48_v32  }
  0x1e   :  { %1009 = vmatmul.mubr.msk.f32.gmra.mxu0 %vm151_vm1, %v38_v33 }
  0x1f   :  { %301 = vmatprep.mubr.f32.mxu0 %v1745_v9 }
  0x22   :  { %1010 = vmatmul.mubr.msk.f32.gmra.mxu0 %vm151_vm1, %v39_v34 }
  0x23   :  { %307 = vmatprep.mubr.f32.mxu0 %v1745_v9 }
  0x26   :  { %1011 = vmatmul.mubr.msk.f32.gmra.mxu0 %vm151_vm1, %v40_v35 }
  0x27   :  { %313 = vmatprep.mubr.f32.mxu0 %v1745_v9 }
  0x2a   :  { %1012 = vmatmul.mubr.msk.f32.gmra.mxu0 %vm151_vm1, %v41_v36 }
  0x2b   :  { %319 = vmatprep.mubr.f32.mxu0 %v1745_v9 }
  0x2e   :  { %1013 = vmatmul.mubr.msk.f32.gmra.mxu0 %vm151_vm1, %v42_v37 }
  0x2f   :  { %325 = vmatprep.mubr.f32.mxu0 %v1745_v9 }
  0x32   :  { %1014 = vmatmul.mubr.msk.f32.gmra.mxu0 %vm151_vm1, %v43_v38 }
  0x80   :  { %v74_v42 = vpop.permute.xlu0 %73 }
  0x81   :  { %v133_v51 = vmul.f32 %v1299_v48, %v74_v42  ;;  %v134_v57 = vmul.f32 %v1304_v50, %v74_v42 }
  0x82   :  { %v64_v47 = vpop.permute.xlu1 %63 }
  0x83   :  { %v130_v58 = vmul.f32 %v1304_v50, %v64_v47  ;;  %v129_v60 = vmul.f32 %v1299_v48, %v64_v47 }
  0x87   :  { %v69_v52 = vpop.permute.xlu0 %68  ;;  %v59_v59 = vpop.permute.xlu1 %58 }
  0x88   :  { %v132_v54 = vmul.f32 %v1304_v50, %v69_v52  ;;  %v131_v55 = vmul.f32 %v1299_v48, %v69_v52  ;;  %v128_v63 = vmul.f32 %v1304_v50, %v59_v59  ;;  %v127_v2 = vmul.f32 %v1299_v48, %v59_v59 }
  0x8b   :  { %v114_v33 = vpop.permute.xlu0 %113  ;;  %v109_v35 = vpop.permute.xlu1 %108 }
  0x8f   :  { %v104_v37 = vpop.permute.xlu0 %103 }
  0xc6   :  { %v261_v39 = vpop.f32.mrf.mxu0 }
  0xc7   :  { %v262_v13 = vadd.f32 %v261_v39, %v127_v2  ;;  %v99_v39 = vpop.permute.xlu1 %98 }
  0xc8   :  { %v263_v40 = vpop.f32.mrf.mxu0 }
  0xc9   :  { %v264_v11 = vadd.f32 %v263_v40, %v128_v63  ;;  %v332_v19 = vmax.f32 %v262_v13, 0.0  ;;  %v94_v40 = vpop.permute.xlu0 %93  ;;  %v150_v63 = vmul.f32 %v1304_v50, %v114_v33  ;;  %v146_v13 = vmul.f32 %v1304_v50, %v104_v37 }
  0xca   :  { %v267_v43 = vpop.f32.mrf.mxu0 }
  0xcb   :  { %v268_v7 = vadd.f32 %v267_v43, %v129_v60  ;;  %v333_v18 = vmax.f32 %v264_v11, 0.0  ;;  %v89_v43 = vpop.permute.xlu1 %88  ;;  %v142_v60 = vmul.f32 %v1304_v50, %v94_v40 }
  0xcc   :  { %v269_v46 = vpop.f32.mrf.mxu0 }
  0xcd   :  { %v270_v5 = vadd.f32 %v269_v46, %v130_v58  ;;  %v334_v17 = vmax.f32 %v268_v7, 0.0  ;;  %v84_v47 = vpop.permute.xlu0 %83 }
  0xce   :  { %v273_v49 = vpop.f32.mrf.mxu0 }
  0xcf   :  { %v274_v3 = vadd.f32 %v273_v49, %v131_v55  ;;  %v335_v16 = vmax.f32 %v270_v5, 0.0  ;;  %v79_v52 = vpop.permute.xlu1 %78 }
  0xd0   :  { %v275_v53 = vpop.f32.mrf.mxu0 }
  0xd1   :  { %v276_v0 = vadd.f32 %v275_v53, %v132_v54  ;;  %v336_v14 = vmax.f32 %v274_v3, 0.0  ;;  %v135_v54 = vmul.f32 %v1299_v48, %v79_v52  ;;  %v148_v3 = vmul.f32 %v1304_v50, %v109_v35 }
  0xd2   :  { %v279_v56 = vpop.f32.mrf.mxu0 }
  0xd3   :  { %v280_v61 = vadd.f32 %v279_v56, %v133_v51  ;;  %v337_v12 = vmax.f32 %v276_v0, 0.0  ;;  %v137_v51 = vmul.f32 %v1299_v48, %v84_v47  ;;  %v139_v56 = vmul.f32 %v1299_v48, %v89_v43 }
  0xd4   :  { %v281_v62 = vpop.f32.mrf.mxu0 }
  0xd5   :  { %v282_v1 = vadd.f32 %v281_v62, %v134_v57  ;;  %v338_v8 = vmax.f32 %v280_v61, 0.0  ;;  %v141_v57 = vmul.f32 %v1299_v48, %v94_v40 }
  0xd6   :  { %v285_v25 = vpop.f32.mrf.mxu0 }
  0xd7   :  { %v339_v6 = vmax.f32 %v282_v1, 0.0  ;;  %v1350_v61 = vadd.f32 %v285_v25, %v135_v54  ;;  %v149_v1 = vmul.f32 %v1299_v48, %v114_v33  ;;  %v140_v33 = vmul.f32 %v1304_v50, %v89_v43 }
  0xd8   :  { %v1334_v26 = vpop.f32.mrf.mxu0  ;;  %v136_v54 = vmul.f32 %v1304_v50, %v79_v52 }
  0xd9   :  { %621 = vmatprep.subr.mxu1 %v339_v6  ;;  %1769 = vst [vmem:[#allocation11_spill] sm:$0xff] %v1350_v61  ;;  %v356_v11 = vand.u32 2147483647, %v1350_v61 }
  0xda   :  { %622 = vmatpush1.msra.mxu1 %v338_v8  ;;  %v291_v27 = vpop.f32.mrf.mxu0  ;;  %v147_v8 = vmul.f32 %v1299_v48, %v109_v35 }
  0xdb   :  { %623 = vmatprep.subr.mxu1 %v337_v12  ;;  %v1341_v53 = vadd.f32 %v291_v27, %v137_v51  ;;  %v143_v27 = vmul.f32 %v1299_v48, %v99_v39 }
  0xdc   :  { %624 = vmatpush1.msra.mxu1 %v336_v14  ;;  %v1336_v28 = vpop.f32.mrf.mxu0 }
  0xdd   :  { %625 = vmatprep.subr.mxu1 %v335_v16  ;;  %1767 = vst [vmem:[#allocation9_spill] sm:$0xff] %v1341_v53  ;;  %v358_v58 = vand.u32 2147483647, %v1341_v53 }
  0xde   :  { %626 = vmatpush1.msra.mxu1 %v334_v17  ;;  %v297_v29 = vpop.f32.mrf.mxu0  ;;  %v145_v17 = vmul.f32 %v1299_v48, %v104_v37 }
  0xdf   :  { %627 = vmatprep.subr.mxu1 %v333_v18  ;;  %v1347_v59 = vadd.f32 %v297_v29, %v139_v56  ;;  %v374_v5 = vsub.f32 0.0, %v358_v58  ;;  %v144_v18 = vmul.f32 %v1304_v50, %v99_v39  ;;  %v372_v29 = vsub.f32 0.0, %v356_v11 }
  0xe0   :  { %628 = vmatpush1.msra.mxu1 %v332_v19  ;;  %v1338_v30 = vpop.f32.mrf.mxu0 }
  0xe1   :  { %1015 = vmatmul.mubr.msk.f32.vlgmr.msra.gmra.mxu1 %vm584_vm2, %v580_v20  ;;  %1768 = vst [vmem:[#allocation10_spill] sm:$0xff] %v1347_v59  ;;  %v360_v6 = vand.u32 2147483647, %v1347_v59  ;;  %v388_v43 = vmul.f32 1.442695, %v372_v29  ;;  %v1394_v56 = vadd.f32 %v1338_v30, %v140_v33 }
  0xe2   :  { %667 = vmatprep.mubr.f32.mxu1 %v1745_v9  ;;  %v303_v31 = vpop.f32.mrf.mxu0 }
  0xe3   :  { %v1353_v0 = vadd.f32 %v303_v31, %v141_v57  ;;  %1772 = vst [vmem:[#allocation14_spill] sm:$0xff] %v1394_v56 }
  0xe4   :  { %v305_v32 = vpop.f32.mrf.mxu0 }
  0xe5   :  { %1016 = vmatmul.mubr.msk.f32.gmra.mxu1 %vm584_vm2, %v581_v22  ;;  %1770 = vst [vmem:[#allocation12_spill] sm:$0xff] %v1353_v0  ;;  %v1356_v2 = vadd.f32 %v305_v32, %v142_v60  ;;  %v362_v14 = vand.u32 2147483647, %v1353_v0  ;;  %v392_v22 = vmul.f32 1.442695, %v374_v5 }
  0xe6   :  { %673 = vmatprep.mubr.f32.mxu1 %v1745_v9  ;;  %v309_v34 = vpop.f32.mrf.mxu0  ;;  %v361_v5 = vand.u32 2147483647, %v1394_v56 }
  0xe7   :  { %1771 = vst [vmem:[#allocation13_spill] sm:$0xff] %v1356_v2  ;;  %v363_v19 = vand.u32 2147483647, %v1356_v2  ;;  %v378_v35 = vsub.f32 0.0, %v362_v14  ;;  %1028 = vpow2.f32 %v392_v22 }
  0xe8   :  { %v311_v36 = vpop.f32.mrf.mxu0 }
  0xe9   :  { %1017 = vmatmul.mubr.msk.f32.gmra.mxu1 %vm584_vm2, %v582_v23  ;;  %v376_v23 = vsub.f32 0.0, %v360_v6  ;;  %v1383_v37 = vadd.f32 %v311_v36, %v144_v18 }
  0xea   :  { %679 = vmatprep.mubr.f32.mxu1 %v1745_v9  ;;  %v315_v38 = vpop.f32.mrf.mxu0 }
  0xeb   :  { %v1379_v31 = vadd.f32 %v315_v38, %v145_v17  ;;  %v396_v48 = vmul.f32 1.442695, %v376_v23 }
  0xec   :  { %v317_v42 = vpop.f32.mrf.mxu0 }
  0xed   :  { %1018 = vmatmul.mubr.msk.f32.gmra.mxu1 %vm584_vm2, %v583_v24  ;;  %v1375_v24 = vadd.f32 %v317_v42, %v146_v13  ;;  %v379_v42 = vsub.f32 0.0, %v363_v19  ;;  %v366_v36 = vand.u32 2147483647, %v1379_v31  ;;  %1030 = vpow2.f32 %v396_v48 }
  0xee   :  { %762 = vmatprep.mubr.f32.mxu1 %v1745_v9  ;;  %v321_v46 = vpop.f32.mrf.mxu0  ;;  %1032 = vpow2.f32 %v388_v43 }
  0xef   :  { %v1373_v20 = vadd.f32 %v321_v46, %v147_v8  ;;  %v138_v46 = vmul.f32 %v1304_v50, %v84_v47  ;;  %v367_v38 = vand.u32 2147483647, %v1375_v24  ;;  %v400_v47 = vmul.f32 1.442695, %v378_v35 }
  0xf0   :  { %v323_v49 = vpop.f32.mrf.mxu0  ;;  %v402_v60 = vmul.f32 1.442695, %v379_v42  ;;  %v382_v30 = vsub.f32 0.0, %v366_v36 }
  0xf1   :  { %v1368_v16 = vadd.f32 %v323_v49, %v148_v3  ;;  %v1387_v49 = vadd.f32 %v309_v34, %v143_v27  ;;  %v368_v51 = vand.u32 2147483647, %v1373_v20  ;;  %v365_v34 = vand.u32 2147483647, %v1383_v37 }
  0xf2   :  { %v327_v55 = vpop.f32.mrf.mxu0  ;;  %v1398_v58 = vadd.f32 %v1336_v28, %v138_v46  ;;  %v383_v50 = vsub.f32 0.0, %v367_v38  ;;  %1034 = vpow2.f32 %v400_v47  ;;  %v408_v18 = vmul.f32 1.442695, %v382_v30 }
  0xf3   :  { %v1364_v12 = vadd.f32 %v327_v55, %v149_v1  ;;  %v369_v40 = vand.u32 2147483647, %v1368_v16  ;;  %v1402_v1 = vadd.f32 %v1334_v26, %v136_v54  ;;  %v381_v6 = vsub.f32 0.0, %v365_v34 }
  0xf4   :  { %v329_v62 = vpop.f32.mrf.mxu0  ;;  %1773 = vst [vmem:[#allocation15_spill] sm:$0xff] %v1398_v58  ;;  %v359_v28 = vand.u32 2147483647, %v1398_v58  ;;  %1036 = vpow2.f32 %v402_v60  ;;  %v410_v14 = vmul.f32 1.442695, %v383_v50  ;;  %v377_v26 = vsub.f32 0.0, %v361_v5 }
  0xf5   :  { %v1360_v7 = vadd.f32 %v329_v62, %v150_v63  ;;  %v370_v32 = vand.u32 2147483647, %v1364_v12  ;;  %v385_v57 = vsub.f32 0.0, %v369_v40  ;;  %v364_v62 = vand.u32 2147483647, %v1387_v49  ;;  %1774 = vst [vmem:[#allocation16_spill] sm:$0xff] %v1402_v1 }
  0xf6   :  { %v384_v63 = vsub.f32 0.0, %v368_v51  ;;  %v357_v17 = vand.u32 2147483647, %v1402_v1  ;;  %v406_v19 = vmul.f32 1.442695, %v381_v6  ;;  %v375_v22 = vsub.f32 0.0, %v359_v28 }
  0xf7   :  { %v371_v25 = vand.u32 2147483647, %v1360_v7  ;;  %v386_v55 = vsub.f32 0.0, %v370_v32  ;;  %v414_v8 = vmul.f32 1.442695, %v385_v57  ;;  %v380_v11 = vsub.f32 0.0, %v364_v62 }
  0xf8   :  { %v412_v13 = vmul.f32 1.442695, %v384_v63  ;;  %v373_v27 = vsub.f32 0.0, %v357_v17  ;;  %v398_v29 = vmul.f32 1.442695, %v377_v26 }
  0xf9   :  { %v387_v39 = vsub.f32 0.0, %v371_v25  ;;  %v416_v3 = vmul.f32 1.442695, %v386_v55  ;;  %v404_v23 = vmul.f32 1.442695, %v380_v11  ;;  %v1407_v25 = vpop.eup %1028 }
  0xfa   :  { %1775 = vst [vmem:[#allocation17_spill] sm:$0xff] %v1407_v25  ;;  %v394_v32 = vmul.f32 1.442695, %v375_v22  ;;  %v438_v33 = vadd.f32 1.0, %v1407_v25  ;;  %v1410_v35 = vpop.eup %1030  ;;  %v390_v40 = vmul.f32 1.442695, %v373_v27 }
  0xfb   :  { %v418_v52 = vmul.f32 1.442695, %v387_v39  ;;  %v1412_v46 = vpop.eup %1032  ;;  %v456_v48 = vadd.f32 1.0, %v1410_v35  ;;  %v441_v54 = vmul.f32 -0.5, %v1407_v25 }
  0xfc   :  { %1776 = vst [vmem:[#allocation18_spill] sm:$0xff] %v1412_v46  ;;  %v420_v39 = vadd.f32 1.0, %v1412_v46  ;;  %v423_v62 = vmul.f32 -0.5, %v1412_v46 }
  0xfd   :  { %1038 = vpow2.f32 %v418_v52  ;;  %v442_v11 = vadd.f32 1.0, %v441_v54 }
  0xfe   :  { %1040 = vpow2.f32 %v416_v3  ;;  %v459_v3 = vmul.f32 -0.5, %v1410_v35  ;;  %v1452_v22 = vadd.f32 1.0, %v423_v62 }
  0xff   :  { %1042 = vpow2.f32 %v414_v8  ;;  %v1414_v42 = vpop.eup %1034 }
 0x100   :  { %1044 = vpow2.f32 %v412_v13  ;;  %v474_v57 = vadd.f32 1.0, %v1414_v42  ;;  %v477_v17 = vmul.f32 -0.5, %v1414_v42  ;;  %1777 = vst [vmem:[#allocation19_spill] sm:$0xff] %v1452_v22 }
 0x101   :  { %1046 = vpow2.f32 %v410_v14  ;;  %v1416_v51 = vpop.eup %1036 }
 0x102   :  { %1048 = vpow2.f32 %v408_v18  ;;  %v483_v52 = vadd.f32 1.0, %v1416_v51 }
 0x103   :  { %1050 = vpow2.f32 %v406_v19 }
 0x104   :  { %1052 = vpow2.f32 %v404_v23 }
 0x105   :  { %1054 = vpow2.f32 %v398_v29 }
 0x106   :  { %1056 = vpow2.f32 %v394_v32  ;;  %v460_v32 = vadd.f32 1.0, %v459_v3 }
 0x107   :  { %1058 = vlog2.f32 %v438_v33 }
 0x108   :  { %1060 = vpow2.f32 %v390_v40 }
 0x109   :  { %1062 = vlog2.f32 %v456_v48 }
 0x10a   :  { %v1419_v38 = vpop.eup %1038  ;;  %1064 = vlog2.f32 %v420_v39  ;;  %v1463_v39 = vmul.f32 %v1407_v25, %v442_v11 }
 0x10b   :  { %v1424_v36 = vpop.eup %1040  ;;  %v555_v6 = vadd.f32 1.0, %v1419_v38  ;;  %1066 = vlog2.f32 %v474_v57 }
 0x10c   :  { %v1430_v60 = vpop.eup %1042  ;;  %v546_v13 = vadd.f32 1.0, %v1424_v36  ;;  %1068 = vlog2.f32 %v483_v52  ;;  %1778 = vst [vmem:[#allocation20_spill] sm:$0xff] %v1463_v39  ;;  %v478_v52 = vadd.f32 1.0, %v477_v17  ;;  %v549_v44 = vmul.f32 -0.5, %v1424_v36 }
 0x10d   :  { %v1436_v30 = vpop.eup %1044  ;;  %v537_v26 = vadd.f32 1.0, %v1430_v60  ;;  %1070 = vlog2.f32 %v555_v6  ;;  %v540_v18 = vmul.f32 -0.5, %v1430_v60 }
 0x10e   :  { %v1441_v8 = vpop.eup %1046  ;;  %v528_v27 = vadd.f32 1.0, %v1436_v30  ;;  %1072 = vlog2.f32 %v546_v13  ;;  %v1479_v13 = vmul.f32 %v1410_v35, %v460_v32  ;;  %v1491_v32 = vmul.f32 %v1414_v42, %v478_v52 }
 0x10f   :  { %v1445_v14 = vpop.eup %1048  ;;  %v519_v48 = vadd.f32 1.0, %v1441_v8  ;;  %1074 = vlog2.f32 %v537_v26  ;;  %v486_v26 = vmul.f32 -0.5, %v1416_v51  ;;  %v522_v52 = vmul.f32 -0.5, %v1441_v8 }
 0x110   :  { %v1450_v19 = vpop.eup %1050  ;;  %v510_v54 = vadd.f32 1.0, %v1445_v14  ;;  %1076 = vlog2.f32 %v528_v27  ;;  %1779 = vst [vmem:[#allocation21_spill] sm:$0xff] %v1479_v13  ;;  %v513_v47 = vmul.f32 -0.5, %v1445_v14  ;;  %v541_v46 = vadd.f32 1.0, %v540_v18 }
 0x111   :  { %v1456_v29 = vpop.eup %1052  ;;  %v501_v3 = vadd.f32 1.0, %v1450_v19  ;;  %1078 = vlog2.f32 %v519_v48  ;;  %v504_v34 = vmul.f32 -0.5, %v1450_v19  ;;  %v487_v57 = vadd.f32 1.0, %v486_v26 }
 0x112   :  { %v1471_v45 = vpop.eup %1054  ;;  %v492_v6 = vadd.f32 1.0, %v1456_v29  ;;  %v495_v11 = vmul.f32 -0.5, %v1456_v29  ;;  %1080 = vlog2.f32 %v510_v54  ;;  %v498_v5 = vand.u32 2147483647, %v1456_v29 }
 0x113   :  { %v1476_v43 = vpop.eup %1056  ;;  %1082 = vlog2.f32 %v501_v3  ;;  %v465_v48 = vadd.f32 1.0, %v1471_v45  ;;  %v514_v63 = vadd.f32 1.0, %v513_v47  ;;  %v531_v3 = vmul.f32 -0.5, %v1436_v30 }
 0x114   :  { %v1059_v28 = vpop.eup %1058  ;;  %1084 = vlog2.f32 %v492_v6  ;;  %v496_v54 = vadd.f32 1.0, %v495_v11  ;;  %v447_v41 = vadd.f32 1.0, %v1476_v43  ;;  %v534_v6 = vand.u32 2147483647, %v1436_v30 }
 0x115   :  { %v1488_v23 = vpop.eup %1060  ;;  %v1499_v33 = vmul.f32 0.6931472, %v1059_v28  ;;  %v505_v11 = vadd.f32 1.0, %v504_v34  ;;  %v558_v28 = vmul.f32 -0.5, %v1419_v38  ;;  %1086 = vlog2.f32 %v465_v48 }
 0x116   :  { %v1063_v27 = vpop.eup %1062  ;;  %v429_v15 = vadd.f32 1.0, %v1488_v23  ;;  %v1515_v10 = vmul.f32 %v1456_v29, %v496_v54  ;;  %v516_v47 = vand.u32 2147483647, %v1445_v14  ;;  %v525_v34 = vand.u32 2147483647, %v1441_v8 }
 0x117   :  { %1780 = vst [vmem:[#allocation22_spill] sm:$0xff] %v1499_v33  ;;  %v1507_v62 = vpop.eup %1064  ;;  %v1522_v61 = vmul.f32 0.6931472, %v1063_v27  ;;  %v523_v1 = vadd.f32 1.0, %v522_v52  ;;  %v507_v48 = vand.u32 2147483647, %v1450_v19  ;;  %1088 = vlog2.f32 %v447_v41 }
 0x118   :  { %v1512_v26 = vpop.eup %1066  ;;  %v1526_v53 = vmul.f32 %v1445_v14, %v514_v63  ;;  %v532_v29 = vadd.f32 1.0, %v531_v3  ;;  %v1529_v54 = vmul.f32 %v1450_v19, %v505_v11  ;;  %v1532_v56 = vmul.f32 %v1416_v51, %v487_v57 }
 0x119   :  { %v1520_v21 = vpop.eup %1068  ;;  %vm1534_vm3 = vcmp.lt.f32.partialorder %v534_v6, 0.0004427343  ;;  %v559_v33 = vadd.f32 1.0, %v558_v28  ;;  %1090 = vlog2.f32 %v429_v15  ;;  %v550_v22 = vadd.f32 1.0, %v549_v44 }
 0x11a   :  { %v1071_v59 = vpop.eup %1070  ;;  %v561_v14 = vand.u32 2147483647, %v1419_v38  ;;  %v543_v19 = vand.u32 2147483647, %v1430_v60  ;;  %vm1540_vm4 = vcmp.lt.f32.partialorder %v525_v34, 0.0004427343  ;;  %v1550_v44 = vmul.f32 %v1441_v8, %v523_v1 }
 0x11b   :  { %v1073_v39 = vpop.eup %1072  ;;  %vm1544_vm5 = vcmp.lt.f32.partialorder %v516_v47, 0.0004427343  ;;  %v552_v11 = vand.u32 2147483647, %v1424_v36  ;;  %v557_v15 = vmul.f32 0.6931472, %v1071_v59 }
 0x11c   :  { %v1075_v41 = vpop.eup %1074  ;;  %v548_v0 = vmul.f32 0.6931472, %v1073_v39  ;;  %vm1553_vm6 = vcmp.lt.f32.partialorder %v507_v48, 0.0004427343  ;;  %v468_v47 = vmul.f32 -0.5, %v1471_v45  ;;  %v1809_v3 = vmax.f32 %v1373_v20, 0.0 }
 0x11d   :  { %v1077_v57 = vpop.eup %1076  ;;  %vm1558_vm7 = vcmp.lt.f32.partialorder %v498_v5, 0.0004427343  ;;  %v539_v1 = vmul.f32 0.6931472, %v1075_v41  ;;  %v1791_v8 = vand.u32 2147483647, %v1416_v51  ;;  %v551_v5 = vmul.f32 %v1424_v36, %v550_v22 }
 0x11e   :  { %v1079_v28 = vpop.eup %1078  ;;  %v530_v48 = vmul.f32 0.6931472, %v1077_v57  ;;  %vm1573_vm9 = vcmp.lt.f32.partialorder %v561_v14, 0.0004427343  ;;  %vm1583_vm11 = vcmp.lt.f32.partialorder %v552_v11, 0.0004427343 }
 0x11f   :  { %v1081_v2 = vpop.eup %1080  ;;  %vm1567_vm8 = vcmp.lt.f32.partialorder %v1791_v8, 0.0004427343  ;;  %v521_v22 = vmul.f32 0.6931472, %v1079_v28  ;;  %v554_v41 = vsel %vm1583_vm11, %v551_v5, %v548_v0  ;;  %vm1593_vm12 = vcmp.lt.f32.partialorder %v543_v19, 0.0004427343 }
 0x120   :  { %v1803_v14 = vand.u32 2147483647, %v1410_v35  ;;  %v694_v0 = vld [vmem:[%s1739_s5] sm:$0x1]  ;;  %v450_v19 = vmul.f32 -0.5, %v1476_v43  ;;  %v1810_v6 = vmov 0.0  }
 0x121   :  { %v485_v28 = vmul.f32 0.6931472, %v1520_v21  ;;  %v476_v27 = vmul.f32 0.6931472, %v1512_v26  ;;  %v1808_v21 = vmax.f32 %v1368_v16, 0.0  ;;  %v1816_v39 = vmax.f32 %v1387_v49, 0.0 }
 0x122   :  { %vm1599_vm13 = vcmp.lt.f32.partialorder %v1803_v14, 0.0004427343  ;;  %v453_v25 = vand.u32 2147483647, %v1476_v43 }
 0x123   :  { %v491_v20 = vsel %vm1567_vm8, %v1532_v56, %v485_v28 }
 0x124   :  { %vm1669_vm15 = vcmp.lt.f32.partialorder %v453_v25, 0.0004427343 }
 0x1a1   :  { %v1459_v40 = vpop.f32.mrf.mxu1 }
 0x1a2   :  { %v686_v57 = vmax.f32 %v1459_v40, 0.0 }
 0x1a3   :  { %v1468_v4 = vpop.f32.mrf.mxu1 }
 0x1a5   :  { %v1482_v55 = vpop.f32.mrf.mxu1 }
 0x1a6   :  { %v688_v36 = vmax.f32 %v1482_v55, 0.0 }
 0x1a7   :  { %v1494_v50 = vpop.f32.mrf.mxu1 }
 0x1a9   :  { %v1501_v9 = vpop.f32.mrf.mxu1 }
 0x1aa   :  { %v690_v59 = vmax.f32 %v1501_v9, 0.0 }
 0x1ab   :  { %v677_v17 = vpop.f32.mrf.mxu1 }
 0x1ac   :  { %v691_v34 = vmax.f32 %v677_v17, 0.0  ;;  %v1083_v17 = vpop.eup %1082 }
 0x1ad   :  { %v681_v58 = vpop.f32.mrf.mxu1 }
 0x1ae   :  { %v692_v18 = vmax.f32 %v681_v58, 0.0  ;;  %v560_v58 = vmul.f32 %v1419_v38, %v559_v33  ;;  %v1085_v38 = vpop.eup %1084  ;;  %v512_v33 = vmul.f32 0.6931472, %v1081_v2  ;;  %v503_v2 = vmul.f32 0.6931472, %v1083_v17 }
 0x1af   :  { %v683_v52 = vpop.f32.mrf.mxu1  ;;  %v1087_v11 = vpop.eup %1086  ;;  %v451_v17 = vadd.f32 1.0, %v450_v19  ;;  %v1830_v19 = vld [vmem:[#allocation22_spill] sm:$0xff] }
 0x1b0   :  { %v693_v63 = vmax.f32 %v683_v52, 0.0  ;;  %v533_v52 = vmul.f32 %v1436_v30, %v532_v29  ;;  %v542_v30 = vmul.f32 %v1430_v60, %v541_v46  ;;  %v689_v29 = vmax.f32 %v1494_v50, 0.0  ;;  %v1089_v8 = vpop.eup %1088 }
 0x1b1   :  { %v1796_v46 = vand.u32 2147483647, %v1414_v42  ;;  %v563_v50 = vsel %vm1573_vm9, %v560_v58, %v557_v15  ;;  %v687_v42 = vmax.f32 %v1468_v4, 0.0  ;;  %v1806_v15 = vmax.f32 %v1360_v7, 0.0 }
 0x1b2   :  { %722 = vmatprep.subr.mxu1 %v693_v63  ;;  %v545_v4 = vsel %vm1593_vm12, %v542_v30, %v539_v1  ;;  %v536_v35 = vsel %vm1534_vm3, %v533_v52, %v530_v48  ;;  %v527_v58 = vsel %vm1540_vm4, %v1550_v44, %v521_v22  ;;  %v469_v1 = vadd.f32 1.0, %v468_v47  ;;  %v1818_v22 = vld [vmem:[#allocation13_spill] sm:$0xff] }
 0x1b3   :  { %723 = vmatpush1.msra.mxu1 %v692_v18  ;;  %vm1579_vm10 = vcmp.lt.f32.partialorder %v1796_v46, 0.0004427343  ;;  %v494_v18 = vmul.f32 0.6931472, %v1085_v38  ;;  %v579_v40 = vadd.f32 %v563_v50, %v1806_v15  ;;  %v432_v30 = vmul.f32 -0.5, %v1488_v23 }
 0x1b4   :  { %724 = vmatprep.subr.mxu1 %v691_v34  ;;  %v1807_v34 = vmax.f32 %v1364_v12, 0.0  ;;  %v518_v7 = vsel %vm1544_vm5, %v1526_v53, %v512_v33  ;;  %v577_v12 = vadd.f32 %v545_v4, %v1808_v21  ;;  %v471_v52 = vand.u32 2147483647, %v1471_v45  ;;  %v1091_v53 = vpop.eup %1090  ;;  %v1829_v4 = vld [vmem:[#allocation18_spill] sm:$0xff]  ;;  %v1839_v21 = vld [vmem:[#allocation15_spill] sm:$0xff] }
 0x1b5   :  { %725 = vmatpush1.msra.mxu1 %v690_v59  ;;  %v576_v44 = vadd.f32 %v536_v35, %v1809_v3  ;;  %v509_v26 = vsel %vm1553_vm6, %v1529_v54, %v503_v2  ;;  %v467_v47 = vmul.f32 0.6931472, %v1087_v11  ;;  %v500_v16 = vsel %vm1558_vm7, %v1515_v10, %v494_v18  ;;  %v1831_v11 = vld [vmem:[#allocation20_spill] sm:$0xff]  ;;  %v1832_v35 = vld [vmem:[#allocation14_spill] sm:$0xff]  ;;  %v1841_v3 = vld [vmem:[#allocation11_spill] sm:$0xff] }
 0x1b6   :  { %726 = vmatprep.subr.mxu1 %v689_v29  ;;  %v578_v59 = vadd.f32 %v554_v41, %v1807_v34  ;;  %v1811_v48 = vmax.f32 %v1375_v24, 0.0  ;;  %v1812_v54 = vmax.f32 %v1379_v31, 0.0  ;;  %v470_v9 = vmul.f32 %v1471_v45, %v469_v1  ;;  %v1835_v34 = vld [vmem:[#allocation9_spill] sm:$0xff] }
 0x1b7   :  { %727 = vmatpush1.msra.mxu1 %v688_v36  ;;  %v449_v38 = vmul.f32 0.6931472, %v1089_v8  ;;  %v433_v46 = vadd.f32 1.0, %v432_v30  ;;  %v482_v10 = vsel %vm1579_vm10, %v1491_v32, %v476_v27  ;;  %v1813_v24 = vmax.f32 %v1383_v37, 0.0  ;;  %v1817_v37 = vld [vmem:[#allocation21_spill] sm:$0xff]  ;;  %v1838_v27 = vld [vmem:[#allocation16_spill] sm:$0xff] }
 0x1b8   :  { %728 = vmatprep.subr.mxu1 %v687_v42  ;;  %v575_v5 = vadd.f32 %v527_v58, %v1811_v48  ;;  %v574_v29 = vadd.f32 %v518_v7, %v1812_v54  ;;  %vm1652_vm14 = vcmp.lt.f32.partialorder %v471_v52, 0.0004427343  ;;  %v435_v31 = vand.u32 2147483647, %v1488_v23  ;;  %v1822_v42 = vld [vmem:[#allocation17_spill] sm:$0xff]  ;;  %v1836_v58 = vld [vmem:[#allocation10_spill] sm:$0xff] }
 0x1b9   :  { %729 = vmatpush1.msra.mxu1 %v686_v57  ;;  %v573_v13 = vadd.f32 %v509_v26, %v1813_v24  ;;  %v572_v60 = vadd.f32 %v500_v16, %v1816_v39  ;;  %v473_v45 = vsel %vm1652_vm14, %v470_v9, %v467_v47  ;;  %v452_v51 = vmul.f32 %v1476_v43, %v451_v17  ;;  %v1101_v43 = vld [vmem:[%s1734_s0 + $0x10] sm:$0x3] }
 0x1ba   :  { %790 = vmatprep.subr.mxu1 %v579_v40  ;;  %1019 = vmatmul.mubr.msk.f32.vlgmr.msra.gmra.mxu1 %vm584_vm2, %v694_v0  ;;  %v431_v32 = vmul.f32 0.6931472, %v1091_v53  ;;  %v422_v36 = vmul.f32 0.6931472, %v1507_v62  ;;  %v464_v50 = vsel %vm1599_vm13, %v1817_v37, %v1522_v61  ;;  %v1819_v33 = vmax.f32 %v1818_v22, 0.0  ;;  %v1826_v62 = vld [vmem:[#allocation12_spill] sm:$0xff] }
 0x1bb   :  { %791 = vmatpush1.msra.mxu1 %v578_v59  ;;  %838 = vmatprep.mubr.f32.mxu1 %v1810_v6  ;;  %v1823_v63 = vand.u32 2147483647, %v1822_v42  ;;  %v1827_v14 = vmax.f32 %v1826_v62, 0.0  ;;  %v455_v61 = vsel %vm1669_vm15, %v452_v51, %v449_v38  ;;  %v434_v55 = vmul.f32 %v1488_v23, %v433_v46  ;;  %v1828_v0 = vld [vmem:[#allocation19_spill] sm:$0xff]  ;;  %v769_v6 = vld [vmem:[%s1740_s6] sm:$0x3] }
 0x1bc   :  { %792 = vmatprep.subr.mxu1 %v577_v12  ;;  %v571_v41 = vadd.f32 %v491_v20, %v1819_v33  ;;  %v425_v2 = vmul.f32 %v1829_v4, %v1828_v0  ;;  %v1833_v15 = vmax.f32 %v1832_v35, 0.0  ;;  %vm436_vm1 = vcmp.lt.f32.partialorder %v435_v31, 0.0004427343  ;;  %v1842_v31 = vld [vmem:[#allocation7_spill] sm:$0xff]  ;;  %v1102_v0 = vld [vmem:[%s1734_s0] sm:$0xff] }
 0x1bd   :  { %793 = vmatpush1.msra.mxu1 %v576_v44  ;;  %vm1675_vm0 = vcmp.lt.f32.partialorder %v1823_v63, 0.0004427343  ;;  %v570_v57 = vadd.f32 %v482_v10, %v1827_v14  ;;  %v1834_v28 = vand.u32 2147483647, %v1829_v4  ;;  %v342_v59 = vmax.f32 %v1835_v34, 0.0 }
 0x1be   :  { %794 = vmatprep.subr.mxu1 %v575_v5  ;;  %v446_v18 = vsel %vm1675_vm0, %v1831_v11, %v1830_v19  ;;  %v569_v40 = vadd.f32 %v473_v45, %v1833_v15  ;;  %v1837_v23 = vmax.f32 %v1836_v58, 0.0  ;;  %v437_v30 = vsel %vm436_vm1, %v434_v55, %v431_v32  ;;  %v1843_v32 = vld [vmem:[#allocation8_spill] sm:$0xff]  ;;  %v1100_v33 = vld [vmem:[%s1734_s0 + $0x18] sm:$0x3] }
 0x1bf   :  { %795 = vmatpush1.msra.mxu1 %v574_v29  ;;  %vm427_vm2 = vcmp.lt.f32.partialorder %v1834_v28, 0.0004427343  ;;  %v341_v7 = vmax.f32 %v1838_v27, 0.0  ;;  %v1840_v12 = vmax.f32 %v1839_v21, 0.0  ;;  %v340_v44 = vmax.f32 %v1841_v3, 0.0  ;;  %v1103_v28 = vld [vmem:[%s1734_s0 + $0x8] sm:$0xff] }
 0x1c0   :  { %796 = vmatprep.subr.mxu1 %v573_v13  ;;  %v568_v1 = vadd.f32 %v464_v50, %v1837_v23  ;;  %v428_v8 = vsel %vm427_vm2, %v425_v2, %v422_v36  ;;  %v566_v26 = vadd.f32 %v446_v18, %v342_v59  ;;  %vm770_vm3 = vcmask 523264   ;;  %v1847_v21 = vld [vmem:[#allocation6_spill] sm:$0xff]  ;;  %s1129_s0 = smov [#allocation2]  }
 0x1c1   :  { %797 = vmatpush1.msra.mxu1 %v572_v60  ;;  %v567_v52 = vadd.f32 %v455_v61, %v1840_v12  ;;  %v565_v47 = vadd.f32 %v437_v30, %v341_v7  ;;  %v564_v17 = vadd.f32 %v428_v8, %v340_v44  ;;  %v892_v39 = vcombine.high %v1842_v31, %v1842_v31  ;;  %s993_s26 = sshll.u32 %s1129_s0, 4  ;;  %s994_s26 = int_to_ptr.vmem [resolvable:$true] %s993_s26 }
 0x1c2   :  { %798 = vmatprep.subr.mxu1 %v571_v41  ;;  %v917_v41 = vrot.slane %v1100_v33, 7  ;;  %v916_v62 = vrot.slane %v1101_v43, 7  ;;  %v908_v4 = vrot.slane %v1102_v0, 7  ;;  %v909_v34 = vrot.slane %v1103_v28, 7  ;;  %s1104_s27 = scalar_lea.vmem %s994_s26, 32  ;;  %p1109_p1 = scmp.lt.s32.totalorder %s994_s26, %s994_s26 }
 0x1c3   :  { %799 = vmatpush1.msra.mxu1 %v570_v57  ;;  %v894_v36 = vsub.f32 %v1843_v32, %v892_v39  ;;  %v1844_v57 = vld [vmem:[#allocation5_spill] sm:$0xff]  ;;  %p1105_p0 = scmp.ne.s32.totalorder %s994_s26, %s1104_s27  ;;  %p1110_p2 = scmp.lt.s32.totalorder %s1104_s27, %s1104_s27 }
 0x1c4   :  { %800 = vmatprep.subr.mxu1 %v569_v40  ;;  %v1845_v61 = vsub.s32 0, %v1844_v57  ;;  %v1846_v15 = vsub.s32 1, %v1844_v57 }
 0x1c5   :  { %801 = vmatpush1.msra.mxu1 %v568_v1  ;;  %p1111_p3 = por %p1110_p2, %p1109_p1 }
 0x1c6   :  { %802 = vmatprep.subr.mxu1 %v567_v52  ;;  %v899_v55 = vrot.slane %v894_v36, %v1845_v61  ;;  %v903_v40 = vrot.slane %v894_v36, %v1846_v15 }
 0x1c7   :  { %803 = vmatpush1.msra.mxu1 %v566_v26  ;;  %p1112_p4 = pnand %p1111_p3, %p1105_p0 }
 0x1c8   :  { %804 = vmatprep.subr.mxu1 %v565_v47 }
 0x1c9   :  { %805 = vmatpush1.msra.mxu1 %v564_v17 }
 0x1ca   :  { %1020 = vmatmul.mubr.msk.f32.vlgmr.msra.gmra.mxu1 %vm770_vm3, %v769_v6 }
 0x27a   :  { %v764_v53 = vpop.f32.mrf.mxu1 }
 0x27c   :  { %v766_v16 = vpop.f32.mrf.mxu1 }
 0x27d   :  { %v926_v58 = vcombine.low %v764_v53, %v766_v16 }
 0x27f   :  { %v933_v12 = vrot.slane %v926_v58, %v1847_v21 }
 0x281   :  { %v940_v6 = vrot.slane %v933_v12, %v1847_v21 }
 0x28a   :  { %v840_v48 = vpop.f32.mrf.mxu1 }
 0x28b   :  { %v847_v5 = vand.u32 2147483647, %v840_v48  ;;  %v845_v14 = vmax.f32 %v840_v48, 0.0 }
 0x28c   :  { %v842_v20 = vpop.f32.mrf.mxu1 }
 0x28d   :  { %v849_v25 = vsub.f32 0.0, %v847_v5  ;;  %v848_v54 = vand.u32 2147483647, %v842_v20  ;;  %v846_v35 = vmax.f32 %v842_v20, 0.0  ;;  %v942_v20 = vadd.f32 %v940_v6, %v1843_v32 }
 0x28f   :  { %v851_v29 = vmul.f32 1.442695, %v849_v25  ;;  %v850_v9 = vsub.f32 0.0, %v848_v54 }
 0x291   :  { %1092 = vpow2.f32 %v851_v29  ;;  %v853_v38 = vmul.f32 1.442695, %v850_v9  ;;  %v1848_v9 = vlaneseq }
 0x293   :  { %1094 = vpow2.f32 %v853_v38  ;;  %vm984_vm6 = vcmp.lt.s32.totalorder %v1848_v9, 256 }
 0x29e   :  { %v1093_v46 = vpop.eup %1092 }
 0x29f   :  { %v855_v10 = vadd.f32 1.0, %v1093_v46  ;;  %v858_v56 = vmul.f32 -0.5, %v1093_v46  ;;  %v861_v51 = vand.u32 2147483647, %v1093_v46 }
 0x2a0   :  { %v1095_v24 = vpop.eup %1094 }
 0x2a1   :  { %1096 = vlog2.f32 %v855_v10  ;;  %v864_v13 = vadd.f32 1.0, %v1095_v24  ;;  %v867_v60 = vmul.f32 -0.5, %v1095_v24  ;;  %v859_v45 = vadd.f32 1.0, %v858_v56 }
 0x2a2   :  { %v870_v22 = vand.u32 2147483647, %v1095_v24  ;;  %vm862_vm4 = vcmp.lt.f32.partialorder %v861_v51, 0.0004427343 }
 0x2a3   :  { %1098 = vlog2.f32 %v864_v13  ;;  %v868_v37 = vadd.f32 1.0, %v867_v60  ;;  %v860_v42 = vmul.f32 %v1093_v46, %v859_v45 }
 0x2a4   :  { %vm871_vm5 = vcmp.lt.f32.partialorder %v870_v22, 0.0004427343 }
 0x2a5   :  { %v869_v11 = vmul.f32 %v1095_v24, %v868_v37 }
 0x2ae   :  { %v1097_v50 = vpop.eup %1096 }
 0x2af   :  { %v857_v49 = vmul.f32 0.6931472, %v1097_v50 }
 0x2b0   :  { %v1099_v63 = vpop.eup %1098 }
 0x2b1   :  { %v863_v2 = vsel %vm862_vm4, %v860_v42, %v857_v49  ;;  %v866_v19 = vmul.f32 0.6931472, %v1099_v63 }
 0x2b2   :  { %v873_v18 = vadd.f32 %v863_v2, %v845_v14 }
 0x2b3   :  { %v872_v59 = vsel %vm871_vm5, %v869_v11, %v866_v19 }
 0x2b4   :  { %v906_v23 = vmul.f32 %v899_v55, %v873_v18  ;;  %v920_v1 = vmul.f32 %v916_v62, %v873_v18  ;;  %v874_v30 = vadd.f32 %v872_v59, %v846_v35 }
 0x2b6   :  { %v912_v8 = vmul.f32 %v908_v4, %v906_v23  ;;  %v907_v27 = vmul.f32 %v903_v40, %v874_v30  ;;  %v921_v7 = vmul.f32 %v917_v41, %v874_v30  ;;  %v922_v52 = vmul.f32 0.01, %v920_v1 }
 0x2b8   :  { %v913_v3 = vmul.f32 %v909_v34, %v907_v27  ;;  %v923_v44 = vmul.f32 0.01, %v921_v7  ;;  %v914_v26 = vmul.f32 0.01, %v912_v8 }
 0x2ba   :  { %v915_v47 = vmul.f32 0.01, %v913_v3  ;;  %v964_v17 = vcombine.low %v922_v52, %v923_v44 }
 0x2bc   :  { %v945_v48 = vcombine.low %v914_v26, %v915_v47  ;;  %v971_v5 = vrot.slane %v964_v17, %v1847_v21 }
 0x2be   :  { %v952_v53 = vrot.slane %v945_v48, %v1847_v21  ;;  %v972_v16 = vcombine.high %v971_v5, %v971_v5 }
 0x2c0   :  { %v959_v25 = vrot.slane %v952_v53, %v1847_v21  ;;  %v979_v54 = vrot.slane %v972_v16, %v1847_v21 }
 0x2c2   :  { %v961_v29 = vsub.f32 %v942_v20, %v959_v25 }
 0x2c4   :  { %v981_v38 = vadd.f32 %v979_v54, %v961_v29 }
 0x2c6   :  { %986 = vst.msk [vmem:[#allocation2] sm:$0x3] %vm984_vm6, %v981_v38 }
 0x2c7   :  { %1115 = shalt.err (!%p1112_p4)
}
 0x2c8   :  { %996 = dma.vmem_to_hbm [thread:$0]  %s994_s26, 32, %s1741_s7, [#allocation3]  }
 0x2c9   :  { %1124 = dma.done.wait [#allocation3], 32  }
 0x2ca   :  { %1125 = vsyncadd [#allocation3], 4294967264 }
 0x2cb   :  { %1000 = vsyncpa [#allocation3], 1 }

</bundles_post_ra>
